<compile_context>
chip_gen: v5e
topology: v5e:2x2
jax: 0.10.0
libtpu: 0.0.40
codegen_flags: <defaults>
</compile_context>

<pallas_src>
import functools

import jax
import jax.numpy as jnp
from jax.experimental import pallas as pl
from jax.experimental.pallas import tpu as pltpu


def _round_up(a: int, m: int) -> int:
    return (a + m - 1) // m * m


# ------------------------------- fused kernel --------------------------------

def _gcn_fused_kernel(big_ref, b_ref, x_ref, o_ref):
    """One (batch n, time-tile j) step of the fused gcn forward.

    big_ref : [c_out*Vp, C*Vp]  weight-folded stacked hop operator (bf16, resident)
    b_ref   : [c_out*Vp, 1]     bias, broadcast over nodes (f32, resident)
    x_ref   : [1, C*Vp, TL]     flattened (channel, node) x time input slab
    o_ref   : [1, c_out*Vp, TL] flattened (out-channel, node) x time output slab
    """
    xm = x_ref[0].astype(jnp.bfloat16)                                    # [C*Vp, TL]
    acc = jnp.dot(big_ref[...], xm, preferred_element_type=jnp.float32)   # [c_out*Vp, TL]
    o_ref[0] = (acc + b_ref[...]).astype(o_ref.dtype)


# --------------------------------- wrapper ------------------------------------

@functools.partial(jax.jit, static_argnames=("order", "dropout", "tile_l"))
def gcn_forward(x, supports, weight, bias, order=2, dropout=0.3, tile_l=512):
    """Pallas implementation of gcn.forward (inference semantics).

    x: [N, c_in, V, L]; supports: list of [V, V] adjacencies;
    weight: [c_out, (order*len(supports)+1)*c_in]; bias: [c_out].
    """
    N, C, V, L = x.shape
    c_out = weight.shape[0]
    S = len(supports)
    assert S >= 1, "gcn_forward expects at least one support matrix"
    K = order * S
    assert weight.shape[1] == (K + 1) * C

    # ---- host-side prep: fold W into the stacked hop operators (tiny V x V work)
    Vp = _round_up(V, 8)                                   # sublane-friendly node axis
    eye = jnp.eye(Vp, dtype=jnp.float32)
    hops = [eye]                                           # block order matches torch concat
    for a in supports:
        a_p = jnp.zeros((Vp, Vp), jnp.float32).at[:V, :V].set(a.astype(jnp.float32))
        at = a_p.T                                         # nconv applies A^T on the node axis
        p = at
        hops.append(p)
        for _ in range(2, order + 1):
            p = jnp.matmul(at, p, precision=jax.lax.Precision.HIGHEST)
            hops.append(p)
    hop_t = jnp.stack(hops, axis=0)                                        # [K+1, Vp, Vp]
    w_r = weight.astype(jnp.float32).reshape(c_out, K + 1, C)              # [o, blk, c]
    big = jnp.einsum("obc,bvw->ovcw", w_r, hop_t,
                     precision=jax.lax.Precision.HIGHEST)                  # [o, v, c, w]
    big = big.reshape(c_out * Vp, C * Vp).astype(jnp.bfloat16)             # bf16 MXU lhs
    bias_col = jnp.broadcast_to(bias.astype(jnp.float32)[:, None, None],
                                (c_out, Vp, 1)).reshape(c_out * Vp, 1)

    # TODO(synk): for large graphs where the folded operator no longer fits VMEM
    # (e.g. V~207 with c_out=32), switch to a per-channel accumulate path.
    assert big.size * 2 <= 8 * 2**20, "folded operator too large for VMEM residency"

    # ---- lane-dense time tiling -----------------------------------------------
    L128 = _round_up(L, 128)
    tl = min(tile_l, L128)
    if N == 1 and L128 >= 256:                 # keep >=2 parallel steps for v7x's 2 TCs
        tl = min(tl, _round_up(L128 // 2, 128))
    tl = max(128, _round_up(tl, 128))
    L_pad = _round_up(L, tl)
    n_lt = L_pad // tl

    xp = x
    if Vp != V or L_pad != L:
        xp = jnp.pad(x, ((0, 0), (0, 0), (0, Vp - V), (0, L_pad - L)))
    xp = xp.reshape(N, C * Vp, L_pad)          # merge contiguous dims: free metadata op

    # ---- VMEM budget (per-generation safe) -------------------------------------
    x_bytes = jnp.dtype(x.dtype).itemsize
    io_bytes = 2 * (C * Vp * tl * x_bytes) + 2 * (c_out * Vp * tl * x_bytes)  # 2-deep pipeline
    inner_bytes = C * Vp * tl * 2 + c_out * Vp * tl * 4                       # bf16 rhs + f32 acc
    resident_bytes = big.size * 2 + bias_col.size * 4
    vmem_limit = int(min(48 * 2**20,                     # below v7x 64 MiB physical
                         max(16 * 2**20,                 # above v5e 16 MiB scoped default
                             2 * (io_bytes + inner_bytes) + resident_bytes)))

    out = pl.pallas_call(
        _gcn_fused_kernel,
        out_shape=jax.ShapeDtypeStruct((N, c_out * Vp, L_pad), x.dtype),
        grid=(N, n_lt),
        in_specs=[
            pl.BlockSpec((c_out * Vp, C * Vp), lambda n, j: (0, 0)),   # Big (resident)
            pl.BlockSpec((c_out * Vp, 1), lambda n, j: (0, 0)),        # bias (resident)
            pl.BlockSpec((1, C * Vp, tl), lambda n, j: (n, 0, j)),     # x slab
        ],
        out_specs=pl.BlockSpec((1, c_out * Vp, tl), lambda n, j: (n, 0, j)),
        compiler_params=pltpu.CompilerParams(
            dimension_semantics=("parallel", "parallel"),
            vmem_limit_bytes=vmem_limit,
        ),
    )(big, bias_col, xp)

    out = out.reshape(N, c_out, Vp, L_pad)[:, :, :V, :L]   # split leading dims + crop pad
    # TODO(synk): F.dropout with training=True not reproduced; eval-mode identity.
    return out


# ------------------------------ reference check -------------------------------

def _gcn_reference(x, supports, weight, bias, order=2):
    out = [x]
    for a in supports:
        x1 = jnp.einsum('ncvl,vw->ncwl', x, a)
        out.append(x1)
        for _ in range(2, order + 1):
            x2 = jnp.einsum('ncvl,vw->ncwl', x1, a)
            out.append(x2)
            x1 = x2
    h = jnp.concatenate(out, axis=1)
    return jnp.einsum('oc,ncvl->novl', weight, h) + bias[None, :, None, None]


# ----------------------------------- main --------------------------------------

if __name__ == "__main__":
    key = jax.random.PRNGKey(0)
    N, c_in, V, L = 2, 4, 8, 512
    support_len, order = 3, 2
    c_out = 8
    c_in_total = (order * support_len + 1) * c_in     # 28

    kx, ka, kw, kb = jax.random.split(key, 4)
    x = jax.random.normal(kx, (N, c_in, V, L), dtype=jnp.float32)
    # Row-stochastic supports (Graph-WaveNet uses normalized transition matrices);
    # keeps adjacency powers bounded for the bf16 MXU path.
    supports = []
    for k in jax.random.split(ka, support_len):
        a = jax.random.uniform(k, (V, V), dtype=jnp.float32)
        supports.append(a / a.sum(axis=1, keepdims=True))
    # Conv2d(c_in_total, c_out, kernel_size=(1,1)) params (1x1 kernel squeezed)
    weight = (jax.random.normal(kw, (c_out, c_in_total), dtype=jnp.float32)
              * (1.0 / jnp.sqrt(c_in_total)))
    bias = jax.random.normal(kb, (c_out,), dtype=jnp.float32) * 0.01

    y = gcn_forward(x, supports, weight, bias, order=order, dropout=0.3)
    y = jax.block_until_ready(y)

    y_ref = _gcn_reference(x, supports, weight, bias, order=order)
    assert y.shape == (N, c_out, V, L), y.shape
    # bf16 MXU operands vs f32 reference -> tolerance sized for bf16 quantization.
    assert jnp.allclose(y, y_ref, atol=5e-2, rtol=5e-2), "mismatch vs reference"

    print("KERNEL_OK")
</pallas_src>

<mosaic_0001>
module attributes {stable_mosaic.version = 11 : i64} {
  func.func @_gcn_fused_kernel(%arg0: i32, %arg1: i32, %arg2: memref<64x32xbf16, #tpu.memory_space<vmem>>, %arg3: memref<64x1xf32, #tpu.memory_space<vmem>>, %arg4: memref<1x32x512xf32, #tpu.memory_space<vmem>>, %arg5: memref<1x64x512xf32, #tpu.memory_space<vmem>>) attributes {dimension_semantics = [#tpu.dimension_semantics<parallel>, #tpu.dimension_semantics<parallel>], iteration_bounds = array<i64: 2, 1>, scalar_prefetch = 0 : i64, scratch_operands = 0 : i64, tpu.core_type = #tpu.core_type<tc>, window_params = [{pipeline_mode = #tpu.pipeline_mode<synchronous>, transform_indices = @transform_0, window_bounds = array<i64: 64, 32>}, {pipeline_mode = #tpu.pipeline_mode<synchronous>, transform_indices = @transform_1, window_bounds = array<i64: 64, 1>}, {transform_indices = @transform_2, window_bounds = array<i64: 1, 32, 512>}, {transform_indices = @transform_3, window_bounds = array<i64: 1, 64, 512>}]} {
    %c0 = arith.constant 0 : index
    %c0_0 = arith.constant 0 : index
    %c0_1 = arith.constant 0 : index
    %0 = vector.load %arg4[%c0, %c0_0, %c0_1] : memref<1x32x512xf32, #tpu.memory_space<vmem>>, vector<1x32x512xf32>
    %1 = vector.shape_cast %0 : vector<1x32x512xf32> to vector<32x512xf32>
    %2 = arith.truncf %1 : vector<32x512xf32> to vector<32x512xbf16>
    %c0_2 = arith.constant 0 : index
    %c0_3 = arith.constant 0 : index
    %3 = vector.load %arg2[%c0_2, %c0_3] : memref<64x32xbf16, #tpu.memory_space<vmem>>, vector<64x32xbf16>
    %cst = arith.constant dense<0.000000e+00> : vector<64x512xf32>
    %4 = tpu.matmul %3, %2, %cst {dimension_numbers = #tpu.dot_dimension_numbers<[1], [0], [0], [1], [0, 0, 1, 1], [], []>} : vector<64x32xbf16>, vector<32x512xbf16>, vector<64x512xf32> -> vector<64x512xf32>
    %c0_4 = arith.constant 0 : index
    %c0_5 = arith.constant 0 : index
    %5 = vector.load %arg3[%c0_4, %c0_5] : memref<64x1xf32, #tpu.memory_space<vmem>>, vector<64x1xf32>
    %6 = vector.broadcast %5 : vector<64x1xf32> to vector<64x512xf32>
    %7 = arith.addf %4, %6 : vector<64x512xf32>
    %c0_6 = arith.constant 0 : index
    %c0_7 = arith.constant 0 : index
    %c0_8 = arith.constant 0 : index
    %8 = vector.load %arg5[%c0_6, %c0_7, %c0_8] : memref<1x64x512xf32, #tpu.memory_space<vmem>>, vector<1x64x512xf32>
    %9 = vector.shape_cast %8 : vector<1x64x512xf32> to vector<64x512xf32>
    %10 = vector.shape_cast %7 : vector<64x512xf32> to vector<1x64x512xf32>
    tpu.vector_store %arg5[%c0_6, %c0_7, %c0_8], %10 {strides = array<i32>} : memref<1x64x512xf32, #tpu.memory_space<vmem>>, vector<1x64x512xf32>,
    return
  }
  func.func @transform_0(%arg0: i32, %arg1: i32) -> (i32, i32) {
    %c0_i32 = arith.constant 0 : i32
    %c0_i32_0 = arith.constant 0 : i32
    %c0_i32_1 = arith.constant 0 : i32
    return %c0_i32, %c0_i32_0 : i32, i32
  }
  func.func @transform_1(%arg0: i32, %arg1: i32) -> (i32, i32) {
    %c0_i32 = arith.constant 0 : i32
    %c0_i32_0 = arith.constant 0 : i32
    %c0_i32_1 = arith.constant 0 : i32
    return %c0_i32, %c0_i32_0 : i32, i32
  }
  func.func @transform_2(%arg0: i32, %arg1: i32) -> (i32, i32, i32) {
    %c0_i32 = arith.constant 0 : i32
    %c0_i32_0 = arith.constant 0 : i32
    return %arg0, %c0_i32, %arg1 : i32, i32, i32
  }
  func.func @transform_3(%arg0: i32, %arg1: i32) -> (i32, i32, i32) {
    %c0_i32 = arith.constant 0 : i32
    %c0_i32_0 = arith.constant 0 : i32
    return %arg0, %c0_i32, %arg1 : i32, i32, i32
  }
}

</mosaic_0001>

<bundles_post_ra>
// kernel: gcn_forward.1
= control target key start
LH: loop header
LB: loop body
LE: loop exit
PB: predicated region body
PF: predicated region fallthrough
CT: control target
= control target key end

     0   :  { %8 = vsyncpa [#allocation3], 0  ;;  %s962_s0 = inlined_call_operand.vmem [shape: bf16[64,32], index: 0, kind: input, shape index: {}]   ;;  %s963_s1 = inlined_call_operand.vmem [shape: f32[64,1], index: 1, kind: input, shape index: {}]   ;;  %s964_s2 = inlined_call_operand.vmem [shape: f32[2,32,512], index: 2, kind: input, shape index: {}]   ;;  %s965_s3 = inlined_call_operand.hbm [shape: f32[2,64,512], index: 3, kind: output, shape index: {}]  }
   0x1   :  { %10 = vsyncpa [#allocation3 + $0x1], 0  ;;  %s774_s12 = smov 0   ;;  %s776_s13 = smov 0  }
   0x2   :  { %s778_s14 = smov 0   ;;  %s780_s15 = smov 0  }
   0x3   :  { %s782_s16 = smov 0   ;;  %s784_s17 = smov 0  }
   0x4 LB: > { %s559_s18 = sadd.s32 4294967295, %s749_s17   ;;  %s560_s19 = sadd.s32 4294967294, %s749_s17   ;;  %s749_s17 = sphi %s784_s17, %s16_s17   ;;  %s745_s16 = sphi %s782_s16, %s972_s16   ;;  %s741_s15 = sphi %s780_s15, %s971_s15   ;;  %s737_s14 = sphi %s778_s14, %s970_s14   ;;  %s733_s13 = sphi %s776_s13, %s969_s13   ;;  %s729_s12 = sphi %s774_s12, %s968_s12  }
   0x5   : > { %s28_s20 = sadd.s32 1, %s745_s16  ;;  %s107_s21 = sadd.s32 1, %s737_s14 }
   0x6   : > { %p30_p0 = scmp.ge.s32.totalorder %s28_s20, 2  ;;  %p117_p1 = scmp.ne.s32.totalorder %s737_s14, %s733_s13 }
   0x7   : > { %p118_p2 = scmp.eq.s32.totalorder %s559_s18, 1  ;;  %p123_p3 = scmp.ne.s32.totalorder %s733_s13, %s729_s12 }
   0x8   : > { %s974_s20 = smov (%p30_p0, %s28_s20), 0  ;;  %p124_p5 = scmp.eq.s32.totalorder %s560_s19, 1 }
   0x9   : > { %p814_p4 = por %p118_p2, %p117_p1  ;;  %s102_s23 = ssub.s32 %s745_s16, %s974_s20 }
   0xa   : > { %p563_p6 = scmp.ge.s32.totalorder %s749_s17, 1  ;;  %p105_p7 = scmp.eq.s32.totalorder %s102_s23, 0 }
   0xb   : > { %p821_p8 = por %p124_p5, %p123_p3  ;;  %p161_p9 = scmp.lt.s32.totalorder %s749_s17, 3 }
   0xc   : > { %s827_s25 = scalar_select %p105_p7, %s737_s14, %s107_s21  }
   0xd   : > { %p162_p10 = pnand %p563_p6, %p161_p9 }
   0xe   : > { %p190_p11 = scmp.lt.s32.totalorder (!%p162_p10), %s741_s15, 1  ;;  %s186_s11 = sand.u32 (!%p162_p10), 1, %s733_s13  }
   0xf   : > { %165 = sbr.rel (%p162_p10) target bundleno = 231 (0xe7), region = 32  ;;  %s564_s18 = sshll.u32 (!%p162_p10), %s186_s11, 8 }
  0x10   : > { %s889_s19 = scalar_lea.vmem (!%p162_p10), [#allocation2], %s564_s18  ;;  %s609_s21 = sshll.u32 (!%p162_p10), %s741_s15, 8 }
  0x11   : > { %s476_s27 = scalar_lea.hbm (!%p162_p10), %s965_s3, %s609_s21  ;;  %s463_s29 = scalar_lea.sflag (!%p162_p10), [#allocation3], %s186_s11 }
  0x14   : > { %v233_v0 = vld [vmem:[%s963_s1] sm:$0xff]  ;;  %v751_v1 = vmov 0   ;;  %s191_s28 = scalar_select %p190_p11, %s741_s15, 1  ;;  %v235_v2 = vld [vmem:[%s963_s1 + $0x10] sm:$0xff]  ;;  %v234_v6 = vld [vmem:[%s963_s1 + $0x8] sm:$0xff]  ;;  %vm301_vm0 = vcmask 261120  }
  0x15   : > { %668 = vset.pattern.permute.xlu0 %v751_v1  ;;  %669 = vset.pattern.permute.xlu1 %v751_v1  ;;  %v605_v28 = vld [vmem:[%s962_s0] sm:$0xff]  ;;  %v236_v29 = vld [vmem:[%s963_s1 + $0x18] sm:$0xff]  ;;  %v606_v30 = vld [vmem:[%s962_s0 + $0x8] sm:$0xff]  ;;  %s477_s15 = sshll.u32 %s889_s19, 4  ;;  %s478_s15 = int_to_ptr.vmem [resolvable:$true] %s477_s15 }
  0x16   : > { %243 = vperm.xlu0 %668, %v233_v0   ;;  %670 = vset.pattern.permute.xlu2 %v751_v1  ;;  %s604_s4 = sshll.u32 %s191_s28, 7  ;;  %v240_v31 = vld [vmem:[%s963_s1 + $0x38] sm:$0xff]  ;;  %v239_v32 = vld [vmem:[%s963_s1 + $0x30] sm:$0xff]  ;;  %v237_v33 = vld [vmem:[%s963_s1 + $0x20] sm:$0xff]  ;;  %s479_s28 = sshll.u32 %s476_s27, 4  ;;  %s480_s28 = int_to_ptr.hbm [resolvable:$true] %s479_s28 }
  0x17   : > { %253 = vperm.xlu1 %669, %v235_v2   ;;  %s197_s7 = scalar_lea.vmem %s964_s2, %s604_s4  ;;  %263 = vperm.xlu2 %670, %v237_v33   ;;  %v238_v34 = vld [vmem:[%s963_s1 + $0x28] sm:$0xff]  ;;  %v607_v35 = vld [vmem:[%s962_s0 + $0x10] sm:$0xff]  ;;  %v608_v36 = vld [vmem:[%s962_s0 + $0x18] sm:$0xff]  ;;  %s685_s30 = sshra.s32 %s480_s28, 4  ;;  %s686_s30 = int_to_ptr.hbm [resolvable:$true] %s685_s30 }
  0x18   : > { %v209_v3 = vld [vmem:[%s197_s7 + $0x40] sm:$0xff]  ;;  %v210_v5 = vld [vmem:[%s197_s7 + $0x48] sm:$0xff]  ;;  %v211_v9 = vld [vmem:[%s197_s7 + $0x50] sm:$0xff]  ;;  %s687_s4 = scalar_lea.hbm %s686_s30, 256  ;;  %p692_p1 = scmp.lt.s32.totalorder %s686_s30, %s965_s3 }
  0x19   : > { %v213_v4 = vld [vmem:[%s197_s7 + $0x60] sm:$0xff]  ;;  %v214_v8 = vld [vmem:[%s197_s7 + $0x68] sm:$0xff]  ;;  %v215_v10 = vld [vmem:[%s197_s7 + $0x70] sm:$0xff]  ;;  %p688_p12 = scmp.ne.s32.totalorder %s686_s30, %s687_s4 }
  0x1a   : > { %v221_v7 = vpack.c.bf16 %v213_v4, %v209_v3  ;;  %v222_v11 = vpack.c.bf16 %v214_v8, %v210_v5  ;;  %v223_v12 = vpack.c.bf16 %v215_v10, %v211_v9  ;;  %v212_v13 = vld [vmem:[%s197_s7 + $0x58] sm:$0xff]  ;;  %v201_v15 = vld [vmem:[%s197_s7] sm:$0xff]  ;;  %v202_v18 = vld [vmem:[%s197_s7 + $0x8] sm:$0xff] }
  0x1b   : > { %v216_v14 = vld [vmem:[%s197_s7 + $0x78] sm:$0xff]  ;;  %v205_v17 = vld [vmem:[%s197_s7 + $0x20] sm:$0xff]  ;;  %v206_v19 = vld [vmem:[%s197_s7 + $0x28] sm:$0xff]  ;;  %p689_p13 = pnand %p688_p12, %p814_p4 }
  0x1c   : > { %320 = vmatpush.bf16.msra.mxu0 %v221_v7  ;;  %v224_v16 = vpack.c.bf16 %v216_v14, %v212_v13  ;;  %349 = vmatpush.bf16.msra.mxu1 %v222_v11  ;;  %v217_v20 = vpack.c.bf16 %v205_v17, %v201_v15  ;;  %v218_v21 = vpack.c.bf16 %v206_v19, %v202_v18  ;;  %v203_v22 = vld [vmem:[%s197_s7 + $0x10] sm:$0xff]  ;;  %v204_v24 = vld [vmem:[%s197_s7 + $0x18] sm:$0xff] }
  0x1d   : > { %378 = vmatpush.bf16.msra.mxu2 %v223_v12  ;;  %v207_v23 = vld [vmem:[%s197_s7 + $0x30] sm:$0xff]  ;;  %v208_v26 = vld [vmem:[%s197_s7 + $0x38] sm:$0xff]  ;;  %p690_p0 = pneg %p689_p13  ;;  %s691_s7 = scalar_lea.hbm %s965_s3, 512 }
  0x1e   : > { %407 = vmatpush.bf16.msra.mxu3 %v224_v16  ;;  %v219_v25 = vpack.c.bf16 %v207_v23, %v203_v22  ;;  %248 = vperm.xlu0 %668, %v234_v6   ;;  %v220_v27 = vpack.c.bf16 %v208_v26, %v204_v24  ;;  %p693_p2 = scmp.lt.s32.totalorder %s691_s7, %s687_s4 }
  0x1f   : > { %258 = vperm.xlu1 %669, %v236_v29   ;;  %268 = vperm.xlu2 %670, %v238_v34  }
  0x20   : > { %321 = vmatpush.bf16.msra.mxu0 %v217_v20  ;;  %350 = vmatpush.bf16.msra.mxu1 %v218_v21  ;;  %p694_p3 = por %p693_p2, %p692_p1 }
  0x21   : > { %379 = vmatpush.bf16.msra.mxu2 %v219_v25 }
  0x22   : > { %408 = vmatpush.bf16.msra.mxu3 %v220_v27  ;;  %p695_p5 = pnand %p694_p3, %p690_p0 }
  0x23   : > { %583 = vmatmul.msk.bf16.vlgmr.msra.gmra.mxu0 %vm301_vm0, %v605_v28  ;;  %587 = vmatmul.msk.bf16.vlgmr.msra.gmra.mxu1 %vm301_vm0, %v605_v28 }
  0x24   : > { %591 = vmatmul.msk.bf16.vlgmr.msra.gmra.mxu2 %vm301_vm0, %v605_v28 }
  0x25   : > { %595 = vmatmul.msk.bf16.vlgmr.msra.gmra.mxu3 %vm301_vm0, %v605_v28 }
  0x26   : > { %273 = vperm.xlu0 %668, %v239_v32  }
  0x27   : > { %278 = vperm.xlu1 %669, %v240_v31  }
  0x33   : > { %584 = vmatmul.msk.bf16.gmra.mxu0 %vm301_vm0, %v606_v30  ;;  %588 = vmatmul.msk.bf16.gmra.mxu1 %vm301_vm0, %v606_v30 }
  0x34   : > { %592 = vmatmul.msk.bf16.gmra.mxu2 %vm301_vm0, %v606_v30 }
  0x35   : > { %596 = vmatmul.msk.bf16.gmra.mxu3 %vm301_vm0, %v606_v30 }
  0x43   : > { %585 = vmatmul.msk.bf16.gmra.mxu0 %vm301_vm0, %v607_v35  ;;  %589 = vmatmul.msk.bf16.gmra.mxu1 %vm301_vm0, %v607_v35 }
  0x44   : > { %593 = vmatmul.msk.bf16.gmra.mxu2 %vm301_vm0, %v607_v35 }
  0x45   : > { %597 = vmatmul.msk.bf16.gmra.mxu3 %vm301_vm0, %v607_v35 }
  0x53   : > { %586 = vmatmul.msk.bf16.gmra.mxu0 %vm301_vm0, %v608_v36  ;;  %590 = vmatmul.msk.bf16.gmra.mxu1 %vm301_vm0, %v608_v36 }
  0x54   : > { %594 = vmatmul.msk.bf16.gmra.mxu2 %vm301_vm0, %v608_v36 }
  0x55   : > { %598 = vmatmul.msk.bf16.gmra.mxu3 %vm301_vm0, %v608_v36 }
  0x71   : > { %v264_v5 = vpop.permute.xlu2 %263 }
  0x79   : > { %v269_v14 = vpop.permute.xlu2 %268 }
  0x88   : > { %v244_v37 = vpop.permute.xlu0 %243 }
  0x89   : > { %v254_v51 = vpop.permute.xlu1 %253 }
  0x90   : > { %v249_v42 = vpop.permute.xlu0 %248 }
  0x91   : > { %v259_v60 = vpop.permute.xlu1 %258 }
  0x98   : > { %v274_v23 = vpop.permute.xlu0 %273 }
  0x99   : > { %v279_v32 = vpop.permute.xlu1 %278 }
  0xa0   : > { %v323_v38 = vpop.f32.mrf.mxu0  ;;  %v352_v40 = vpop.f32.mrf.mxu1 }
  0xa1   : > { %v324_v39 = vadd.f32 %v323_v38, %v244_v37  ;;  %v353_v41 = vadd.f32 %v352_v40, %v244_v37 }
  0xa3   : > { %430 = vst [vmem:[%s889_s19] sm:$0xff] %v324_v39 }
  0xa4   : > { %431 = vst [vmem:[%s889_s19 + $0x8] sm:$0xff] %v353_v41 }
  0xa7   : > { %v381_v43 = vpop.f32.mrf.mxu2 }
  0xa8   : > { %v382_v44 = vadd.f32 %v381_v43, %v244_v37  ;;  %v410_v45 = vpop.f32.mrf.mxu3  ;;  %v325_v46 = vpop.f32.mrf.mxu0 }
  0xa9   : > { %v411_v47 = vadd.f32 %v410_v45, %v244_v37  ;;  %v326_v48 = vadd.f32 %v325_v46, %v249_v42  ;;  %v354_v49 = vpop.f32.mrf.mxu1 }
  0xaa   : > { %432 = vst [vmem:[%s889_s19 + $0x10] sm:$0xff] %v382_v44  ;;  %v355_v50 = vadd.f32 %v354_v49, %v249_v42 }
  0xab   : > { %433 = vst [vmem:[%s889_s19 + $0x18] sm:$0xff] %v411_v47 }
  0xac   : > { %434 = vst [vmem:[%s889_s19 + $0x20] sm:$0xff] %v326_v48 }
  0xad   : > { %435 = vst [vmem:[%s889_s19 + $0x28] sm:$0xff] %v355_v50 }
  0xaf   : > { %v383_v52 = vpop.f32.mrf.mxu2 }
  0xb0   : > { %v384_v53 = vadd.f32 %v383_v52, %v249_v42  ;;  %v412_v54 = vpop.f32.mrf.mxu3  ;;  %v328_v55 = vpop.f32.mrf.mxu0 }
  0xb1   : > { %v413_v56 = vadd.f32 %v412_v54, %v249_v42  ;;  %v329_v57 = vadd.f32 %v328_v55, %v254_v51  ;;  %v357_v58 = vpop.f32.mrf.mxu1 }
  0xb2   : > { %436 = vst [vmem:[%s889_s19 + $0x30] sm:$0xff] %v384_v53  ;;  %v358_v59 = vadd.f32 %v357_v58, %v254_v51 }
  0xb3   : > { %437 = vst [vmem:[%s889_s19 + $0x38] sm:$0xff] %v413_v56 }
  0xb4   : > { %438 = vst [vmem:[%s889_s19 + $0x40] sm:$0xff] %v329_v57 }
  0xb5   : > { %439 = vst [vmem:[%s889_s19 + $0x48] sm:$0xff] %v358_v59 }
  0xb7   : > { %v386_v61 = vpop.f32.mrf.mxu2 }
  0xb8   : > { %v387_v62 = vadd.f32 %v386_v61, %v254_v51  ;;  %v415_v63 = vpop.f32.mrf.mxu3  ;;  %v330_v0 = vpop.f32.mrf.mxu0 }
  0xb9   : > { %v416_v1 = vadd.f32 %v415_v63, %v254_v51  ;;  %v331_v2 = vadd.f32 %v330_v0, %v259_v60  ;;  %v359_v3 = vpop.f32.mrf.mxu1 }
  0xba   : > { %440 = vst [vmem:[%s889_s19 + $0x50] sm:$0xff] %v387_v62  ;;  %v360_v4 = vadd.f32 %v359_v3, %v259_v60 }
  0xbb   : > { %441 = vst [vmem:[%s889_s19 + $0x58] sm:$0xff] %v416_v1 }
  0xbc   : > { %442 = vst [vmem:[%s889_s19 + $0x60] sm:$0xff] %v331_v2 }
  0xbd   : > { %443 = vst [vmem:[%s889_s19 + $0x68] sm:$0xff] %v360_v4 }
  0xbf   : > { %v388_v6 = vpop.f32.mrf.mxu2 }
  0xc0   : > { %v389_v7 = vadd.f32 %v388_v6, %v259_v60  ;;  %v417_v8 = vpop.f32.mrf.mxu3  ;;  %v333_v9 = vpop.f32.mrf.mxu0 }
  0xc1   : > { %v418_v10 = vadd.f32 %v417_v8, %v259_v60  ;;  %v334_v11 = vadd.f32 %v333_v9, %v264_v5  ;;  %v362_v12 = vpop.f32.mrf.mxu1 }
  0xc2   : > { %444 = vst [vmem:[%s889_s19 + $0x70] sm:$0xff] %v389_v7  ;;  %v363_v13 = vadd.f32 %v362_v12, %v264_v5 }
  0xc3   : > { %445 = vst [vmem:[%s889_s19 + $0x78] sm:$0xff] %v418_v10 }
  0xc4   : > { %446 = vst [vmem:[%s889_s19 + $0x80] sm:$0xff] %v334_v11 }
  0xc5   : > { %447 = vst [vmem:[%s889_s19 + $0x88] sm:$0xff] %v363_v13 }
  0xc7   : > { %v391_v15 = vpop.f32.mrf.mxu2 }
  0xc8   : > { %v392_v16 = vadd.f32 %v391_v15, %v264_v5  ;;  %v420_v17 = vpop.f32.mrf.mxu3  ;;  %v335_v18 = vpop.f32.mrf.mxu0 }
  0xc9   : > { %v421_v19 = vadd.f32 %v420_v17, %v264_v5  ;;  %v336_v20 = vadd.f32 %v335_v18, %v269_v14  ;;  %v364_v21 = vpop.f32.mrf.mxu1 }
  0xca   : > { %448 = vst [vmem:[%s889_s19 + $0x90] sm:$0xff] %v392_v16  ;;  %v365_v22 = vadd.f32 %v364_v21, %v269_v14 }
  0xcb   : > { %449 = vst [vmem:[%s889_s19 + $0x98] sm:$0xff] %v421_v19 }
  0xcc   : > { %450 = vst [vmem:[%s889_s19 + $0xa0] sm:$0xff] %v336_v20 }
  0xcd   : > { %451 = vst [vmem:[%s889_s19 + $0xa8] sm:$0xff] %v365_v22 }
  0xcf   : > { %v393_v24 = vpop.f32.mrf.mxu2 }
  0xd0   : > { %v394_v25 = vadd.f32 %v393_v24, %v269_v14  ;;  %v422_v26 = vpop.f32.mrf.mxu3  ;;  %v338_v27 = vpop.f32.mrf.mxu0 }
  0xd1   : > { %v423_v28 = vadd.f32 %v422_v26, %v269_v14  ;;  %v339_v29 = vadd.f32 %v338_v27, %v274_v23  ;;  %v367_v30 = vpop.f32.mrf.mxu1 }
  0xd2   : > { %452 = vst [vmem:[%s889_s19 + $0xb0] sm:$0xff] %v394_v25  ;;  %v368_v31 = vadd.f32 %v367_v30, %v274_v23 }
  0xd3   : > { %453 = vst [vmem:[%s889_s19 + $0xb8] sm:$0xff] %v423_v28 }
  0xd4   : > { %454 = vst [vmem:[%s889_s19 + $0xc0] sm:$0xff] %v339_v29 }
  0xd5   : > { %455 = vst [vmem:[%s889_s19 + $0xc8] sm:$0xff] %v368_v31 }
  0xd7   : > { %v396_v33 = vpop.f32.mrf.mxu2 }
  0xd8   : > { %v397_v34 = vadd.f32 %v396_v33, %v274_v23  ;;  %v425_v35 = vpop.f32.mrf.mxu3  ;;  %v340_v36 = vpop.f32.mrf.mxu0 }
  0xd9   : > { %v426_v37 = vadd.f32 %v425_v35, %v274_v23  ;;  %v341_v38 = vadd.f32 %v340_v36, %v279_v32  ;;  %v369_v39 = vpop.f32.mrf.mxu1 }
  0xda   : > { %456 = vst [vmem:[%s889_s19 + $0xd0] sm:$0xff] %v397_v34  ;;  %v370_v40 = vadd.f32 %v369_v39, %v279_v32 }
  0xdb   : > { %457 = vst [vmem:[%s889_s19 + $0xd8] sm:$0xff] %v426_v37 }
  0xdc   : > { %458 = vst [vmem:[%s889_s19 + $0xe0] sm:$0xff] %v341_v38 }
  0xdd   : > { %459 = vst [vmem:[%s889_s19 + $0xe8] sm:$0xff] %v370_v40 }
  0xdf   : > { %v398_v41 = vpop.f32.mrf.mxu2 }
  0xe0   : > { %v399_v42 = vadd.f32 %v398_v41, %v279_v32  ;;  %v427_v43 = vpop.f32.mrf.mxu3 }
  0xe1   : > { %v428_v44 = vadd.f32 %v427_v43, %v279_v32 }
  0xe2   : > { %460 = vst [vmem:[%s889_s19 + $0xf0] sm:$0xff] %v399_v42 }
  0xe3   : > { %461 = vst [vmem:[%s889_s19 + $0xf8] sm:$0xff] %v428_v44 }
  0xe4   : > { %698 = shalt.err (!%p695_p5)
}
  0xe5   : > { %s752_s10 = smov 512   ;;  %s753_s11 = smov 32  }
  0xe6   : > { %610 = dma.vmem_to_hbm [thread:$0]  (%p814_p4), %s478_s15, 4096, %s480_s28, %s463_s29, %s752_s10, %s752_s10, %s753_s11  }
  0xe7 PF: > { %p616_p6 = scmp.ge.s32.totalorder %s749_s17, 2  ;;  %s494_s18 = sand.u32 1, %s729_s12  }
  0xe8   : > { %s495_s19 = scalar_lea.sflag [#allocation3], %s494_s18 }
  0xe9   : > { %p613_p7 = pnand %p616_p6, %p821_p8 }
  0xeb   : > { %p614_p9 = pneg %p613_p7 }
  0xed   : > { %724 = dma.done.wait (%p614_p9), %s495_s19, 4096  }
  0xee   : > { %726 = vsyncadd (%p614_p9), %s495_s19, 4294963200  ;;  %s16_s17 = sadd.s32 1, %s749_s17   ;;  %s968_s12 = smov %s733_s13 }
  0xef   : > { %p13_p10 = scmp.ge.s32.totalorder %s16_s17, 4   ;;  %s969_s13 = smov %s737_s14 }
  0xf0   : > { %s970_s14 = smov %s827_s25  ;;  %s971_s15 = smov %s745_s16 }
  0xf1   : > { %s972_s16 = smov %s974_s20  ;;  %15 = sbr.rel (!%p13_p10) target bundleno = 4 (0x4), region = 67 }
  0xf6   :  { %501 = vsyncpa [#allocation3], 1 }
  0xf7   :  { %503 = vsyncpa [#allocation3 + $0x1], 1 }

</bundles_post_ra>
